<compile_context>
chip_gen: v7x
topology: tpu7x:2x2x1
jax: 0.10.0
libtpu: 0.0.40
codegen_flags: <defaults>
</compile_context>

<pallas_src>
import functools

import jax
import jax.numpy as jnp
from jax import lax
from jax.experimental import pallas as pl
from jax.experimental.pallas import tpu as pltpu

EPS = 1e-08
LANES = 128
SUBLANES = 8


def _focal_f32(p, g, gamma, alpha):
    """Elementwise focal-fidelity term in f32 (used by kernel, tail and ref)."""
    s = jnp.sqrt(p * g + EPS) + jnp.sqrt((1.0 - p) * (1.0 - g) + EPS)
    fid = 1.0 - s
    return alpha * (1.0 - jnp.exp(-gamma * fid) * s)


def _focal_fidelity_kernel(p_ref, g_ref, o_ref, acc_ref, *,
                           gamma, alpha, rows_valid, block_rows,
                           blocks_per_split, num_blocks, ragged, overcover):
    c = pl.program_id(0)          # split axis (core-parallel on v7x)
    i = pl.program_id(1)          # reduction axis within the split
    ni = pl.num_programs(1)

    @pl.when(i == 0)
    def _():
        acc_ref[...] = jnp.zeros_like(acc_ref)

    logical_block = c * blocks_per_split + i

    def accumulate(mask_rows):
        # Native-dtype load, f32 compute (v5e has no bf16 VPU/EUP).
        p = p_ref[...].astype(jnp.float32)
        g = g_ref[...].astype(jnp.float32)
        focal = _focal_f32(p, g, gamma, alpha)
        if mask_rows:
            # Only the ragged last block pays for iota/compare/select, and it
            # is a row-level (not flat-element) comparison.
            row_idx = lax.broadcasted_iota(jnp.int32, (block_rows, LANES), 0)
            valid = (logical_block * block_rows + row_idx) < rows_valid
            focal = jnp.where(valid, focal, 0.0)
        # Collapse the block to a per-lane (8,128) partial sum with pure VPU
        # adds; no cross-lane XLU reduce inside the hot loop.
        acc_ref[...] += jnp.sum(focal.reshape(-1, SUBLANES, LANES), axis=0)

    full_blocks = num_blocks - 1 if ragged else num_blocks

    if ragged or overcover:
        @pl.when(logical_block < full_blocks)
        def _():
            accumulate(mask_rows=False)      # unmasked fast path

        if ragged:
            @pl.when(logical_block == num_blocks - 1)
            def _():
                accumulate(mask_rows=True)   # masked tail block only
        # logical_block >= num_blocks (over-covered split steps): no compute.
    else:
        accumulate(mask_rows=False)

    @pl.when(i == ni - 1)
    def _():
        o_ref[...] = acc_ref[...].reshape(1, SUBLANES, LANES)


def _device_defaults():
    """(num_splits, block_rows, input buffer_count) chosen per TPU generation."""
    kind = ""
    try:
        kind = jax.devices()[0].device_kind.lower()
    except Exception:  # pragma: no cover - defensive
        pass
    if "v7" in kind:
        # 2 TensorCores/chip, ~3.2 TB/s HBM: shard the split axis across cores,
        # use bigger tiles and deeper input buffering.
        return 2, 8192, 3
    # Single-TensorCore chips (v5e/v6e): no split axis, 2 MiB f32 tiles.
    return 1, 4096, 2


def focal_fidelity_loss(p, g, gamma=1.0, alpha=1.0,
                        block_rows=None, num_splits=None):
    """Pallas TPU implementation of Focal_Fidelity_Loss.forward."""
    p_flat = jnp.reshape(p, (-1,))
    g_flat = jnp.reshape(g, (-1,))
    n_total = p_flat.shape[0]
    assert g_flat.shape[0] == n_total

    auto_splits, auto_rows, buffer_count = _device_defaults()
    if block_rows is None:
        block_rows = auto_rows
    if num_splits is None:
        num_splits = auto_splits

    itemsize = jnp.dtype(p_flat.dtype).itemsize
    # Sublane multiple depends on dtype packing (8 for f32, 16 for bf16, ...).
    sub_mult = SUBLANES * max(1, 4 // max(1, itemsize))

    # Lane-divisible body goes through the kernel; the <128-element tail is
    # handled in plain JAX (no full-array jnp.pad copy).
    rows = n_total // LANES
    n_body = rows * LANES

    if rows < sub_mult:
        # Too small for a legal (8,128) tile: pure-JAX fallback (tiny input).
        focal = _focal_f32(p_flat.astype(jnp.float32),
                           g_flat.astype(jnp.float32), gamma, alpha)
        return jnp.sum(focal) / jnp.float32(n_total)

    if n_body == n_total:
        p2 = p_flat.reshape(rows, LANES)          # free reshape, no copy
        g2 = g_flat.reshape(rows, LANES)
    else:
        # Prefix slice of the lane-divisible body (tail added below).
        p2 = lax.slice(p_flat, (0,), (n_body,)).reshape(rows, LANES)
        g2 = lax.slice(g_flat, (0,), (n_body,)).reshape(rows, LANES)

    block_rows = max(sub_mult, min(int(block_rows), (rows // sub_mult) * sub_mult))
    block_rows = (block_rows // sub_mult) * sub_mult

    num_blocks = pl.cdiv(rows, block_rows)
    num_splits = max(1, min(int(num_splits), num_blocks))
    blocks_per_split = pl.cdiv(num_blocks, num_splits)
    ragged = (rows % block_rows) != 0
    overcover = (num_splits * blocks_per_split) > num_blocks

    def in_index_map(c, i):
        # Clamp so the DMA stays in bounds for over-covered steps of the last
        # split; those steps perform no compute (skipped via pl.when).
        return (jnp.minimum(c * blocks_per_split + i, num_blocks - 1), 0)

    kernel = functools.partial(
        _focal_fidelity_kernel,
        gamma=float(gamma), alpha=float(alpha),
        rows_valid=rows, block_rows=block_rows,
        blocks_per_split=blocks_per_split, num_blocks=num_blocks,
        ragged=ragged, overcover=overcover,
    )

    # Deeper input pipelining only where requested (v7x); default elsewhere.
    spec_kwargs = {}
    if buffer_count != 2 and hasattr(pl, "Buffered"):
        spec_kwargs["pipeline_mode"] = pl.Buffered(buffer_count)
    in_spec = pl.BlockSpec((block_rows, LANES), in_index_map, **spec_kwargs)

    if num_splits > 1:
        # Real TensorCore sharding of the split axis on multi-core chips.
        split_sem = getattr(pltpu, "CORE_PARALLEL", pltpu.PARALLEL)
    else:
        split_sem = pltpu.ARBITRARY

    cost = pl.CostEstimate(
        flops=12 * n_body,
        transcendentals=3 * n_body,                      # 2 sqrt + 1 exp / elem
        bytes_accessed=2 * n_body * itemsize + num_splits * SUBLANES * LANES * 4,
    )

    # VMEM budget: 2 inputs x buffer_count x block tile; worst case (v7x,
    # 8192 rows f32, 3 buffers) = 24 MiB, inside every generation's scoped
    # default, so no explicit vmem_limit_bytes is needed.
    partials = pl.pallas_call(
        kernel,
        out_shape=jax.ShapeDtypeStruct((num_splits, SUBLANES, LANES), jnp.float32),
        grid_spec=pltpu.PrefetchScalarGridSpec(
            num_scalar_prefetch=0,
            grid=(num_splits, blocks_per_split),
            in_specs=[in_spec, in_spec],
            out_specs=pl.BlockSpec((1, SUBLANES, LANES), lambda c, i: (c, 0, 0)),
            scratch_shapes=[pltpu.VMEM((SUBLANES, LANES), jnp.float32)],
        ),
        compiler_params=pltpu.CompilerParams(
            dimension_semantics=(split_sem, pltpu.ARBITRARY),
        ),
        cost_estimate=cost,
    )(p2, g2)

    total = jnp.sum(partials)   # single tiny cross-lane / cross-split reduce

    if n_body < n_total:
        # <128-element tail: essentially free in plain JAX.
        p_tail = lax.slice(p_flat, (n_body,), (n_total,)).astype(jnp.float32)
        g_tail = lax.slice(g_flat, (n_body,), (n_total,)).astype(jnp.float32)
        total = total + jnp.sum(_focal_f32(p_tail, g_tail, gamma, alpha))

    return total / jnp.float32(n_total)


def focal_fidelity_loss_ref(p, g, gamma=1.0, alpha=1.0):
    """Pure-JAX reference matching the PyTorch module."""
    p = jnp.reshape(p, (-1, 1)).astype(jnp.float32)
    g = jnp.reshape(g, (-1, 1)).astype(jnp.float32)
    return jnp.mean(_focal_f32(p, g, gamma, alpha))


if __name__ == "__main__":
    key = jax.random.PRNGKey(0)
    kp, kg = jax.random.split(key)

    # Prediction / ground-truth probabilities in [0, 1], NCHW-like shape.
    shape = (2, 4, 16, 16)  # flattens to 2048 = 16 * 128 (lane-divisible path)
    p = jax.random.uniform(kp, shape, dtype=jnp.float32)
    g = jax.random.uniform(kg, shape, dtype=jnp.float32)

    out = focal_fidelity_loss(p, g, gamma=1.0, alpha=1.0)
    out = jax.block_until_ready(out)
    ref = focal_fidelity_loss_ref(p, g, gamma=1.0, alpha=1.0)
    assert jnp.allclose(out, ref, atol=1e-5, rtol=1e-5), (out, ref)

    # Non-lane-divisible size exercises the masked ragged block + JAX tail path.
    n2 = 2000
    p2 = jax.random.uniform(kp, (n2,), dtype=jnp.float32)
    g2 = jax.random.uniform(kg, (n2,), dtype=jnp.float32)
    out2 = jax.block_until_ready(focal_fidelity_loss(p2, g2, gamma=1.0, alpha=1.0))
    ref2 = focal_fidelity_loss_ref(p2, g2, gamma=1.0, alpha=1.0)
    assert jnp.allclose(out2, ref2, atol=1e-5, rtol=1e-5), (out2, ref2)

    print("KERNEL_OK")
</pallas_src>

<mosaic_0001>
module attributes {stable_mosaic.version = 11 : i64} {
  func.func @_focal_fidelity_kernel(%arg0: i32, %arg1: i32, %arg2: memref<16x128xf32, #tpu.memory_space<vmem>>, %arg3: memref<16x128xf32, #tpu.memory_space<vmem>>, %arg4: memref<1x8x128xf32, #tpu.memory_space<vmem>>, %arg5: memref<8x128xf32, #tpu.memory_space<vmem>>) attributes {dimension_semantics = [#tpu.dimension_semantics<arbitrary>, #tpu.dimension_semantics<arbitrary>], iteration_bounds = array<i64: 1, 1>, scalar_prefetch = 0 : i64, scratch_operands = 1 : i64, tpu.core_type = #tpu.core_type<tc>, window_params = [{transform_indices = @transform_0, window_bounds = array<i64: 16, 128>}, {transform_indices = @transform_1, window_bounds = array<i64: 16, 128>}, {transform_indices = @transform_2, window_bounds = array<i64: 1, 8, 128>}]} {
    %c0_i32 = arith.constant 0 : i32
    %0 = arith.cmpi eq, %arg1, %c0_i32 : i32
    %1 = arith.extui %0 : i1 to i32
    %c0_i32_0 = arith.constant 0 : i32
    %2 = arith.cmpi ne, %1, %c0_i32_0 : i32
    scf.if %2 {
      %cst_18 = arith.constant 0.000000e+00 : f32
      %36 = vector.broadcast %cst_18 : f32 to vector<8x128xf32>
      %c0_19 = arith.constant 0 : index
      %c0_20 = arith.constant 0 : index
      %37 = vector.load %arg5[%c0_19, %c0_20] : memref<8x128xf32, #tpu.memory_space<vmem>>, vector<8x128xf32>
      tpu.vector_store %arg5[%c0_19, %c0_20], %36 {strides = array<i32>} : memref<8x128xf32, #tpu.memory_space<vmem>>, vector<8x128xf32>,
    } else {
    }
    %c0 = arith.constant 0 : index
    %c0_1 = arith.constant 0 : index
    %3 = vector.load %arg2[%c0, %c0_1] : memref<16x128xf32, #tpu.memory_space<vmem>>, vector<16x128xf32>
    %c0_2 = arith.constant 0 : index
    %c0_3 = arith.constant 0 : index
    %4 = vector.load %arg3[%c0_2, %c0_3] : memref<16x128xf32, #tpu.memory_space<vmem>>, vector<16x128xf32>
    %5 = arith.mulf %3, %4 : vector<16x128xf32>
    %cst = arith.constant 9.99999993E-9 : f32
    %6 = vector.broadcast %cst : f32 to vector<16x128xf32>
    %7 = arith.addf %5, %6 : vector<16x128xf32>
    %8 = math.sqrt %7 : vector<16x128xf32>
    %cst_4 = arith.constant 1.000000e+00 : f32
    %9 = vector.broadcast %cst_4 : f32 to vector<16x128xf32>
    %10 = arith.subf %9, %3 : vector<16x128xf32>
    %cst_5 = arith.constant 1.000000e+00 : f32
    %11 = vector.broadcast %cst_5 : f32 to vector<16x128xf32>
    %12 = arith.subf %11, %4 : vector<16x128xf32>
    %13 = arith.mulf %10, %12 : vector<16x128xf32>
    %cst_6 = arith.constant 9.99999993E-9 : f32
    %14 = vector.broadcast %cst_6 : f32 to vector<16x128xf32>
    %15 = arith.addf %13, %14 : vector<16x128xf32>
    %16 = math.sqrt %15 : vector<16x128xf32>
    %17 = arith.addf %8, %16 : vector<16x128xf32>
    %cst_7 = arith.constant 1.000000e+00 : f32
    %18 = vector.broadcast %cst_7 : f32 to vector<16x128xf32>
    %19 = arith.subf %18, %17 : vector<16x128xf32>
    %cst_8 = arith.constant -1.000000e+00 : f32
    %20 = vector.broadcast %cst_8 : f32 to vector<16x128xf32>
    %21 = arith.mulf %20, %19 : vector<16x128xf32>
    %22 = math.exp %21 : vector<16x128xf32>
    %23 = arith.mulf %22, %17 : vector<16x128xf32>
    %cst_9 = arith.constant 1.000000e+00 : f32
    %24 = vector.broadcast %cst_9 : f32 to vector<16x128xf32>
    %25 = arith.subf %24, %23 : vector<16x128xf32>
    %cst_10 = arith.constant 1.000000e+00 : f32
    %26 = vector.broadcast %cst_10 : f32 to vector<16x128xf32>
    %27 = arith.mulf %26, %25 : vector<16x128xf32>
    %c0_11 = arith.constant 0 : index
    %c0_12 = arith.constant 0 : index
    %28 = vector.load %arg5[%c0_11, %c0_12] : memref<8x128xf32, #tpu.memory_space<vmem>>, vector<8x128xf32>
    %29 = vector.shape_cast %27 : vector<16x128xf32> to vector<2x8x128xf32>
    %cst_13 = arith.constant dense<0.000000e+00> : vector<8x128xf32>
    %30 = vector.multi_reduction <add>, %29, %cst_13 [0] : vector<2x8x128xf32> to vector<8x128xf32>
    %31 = arith.addf %28, %30 : vector<8x128xf32>
    %c0_14 = arith.constant 0 : index
    %c0_15 = arith.constant 0 : index
    %32 = vector.load %arg5[%c0_14, %c0_15] : memref<8x128xf32, #tpu.memory_space<vmem>>, vector<8x128xf32>
    tpu.vector_store %arg5[%c0_14, %c0_15], %31 {strides = array<i32>} : memref<8x128xf32, #tpu.memory_space<vmem>>, vector<8x128xf32>,
    %c0_i32_16 = arith.constant 0 : i32
    %33 = arith.cmpi eq, %arg1, %c0_i32_16 : i32
    %34 = arith.extui %33 : i1 to i32
    %c0_i32_17 = arith.constant 0 : i32
    %35 = arith.cmpi ne, %34, %c0_i32_17 : i32
    scf.if %35 {
      %c0_18 = arith.constant 0 : index
      %c0_19 = arith.constant 0 : index
      %36 = vector.load %arg5[%c0_18, %c0_19] : memref<8x128xf32, #tpu.memory_space<vmem>>, vector<8x128xf32>
      %37 = vector.shape_cast %36 : vector<8x128xf32> to vector<1x8x128xf32>
      %c0_20 = arith.constant 0 : index
      %c0_21 = arith.constant 0 : index
      %c0_22 = arith.constant 0 : index
      %38 = vector.load %arg4[%c0_20, %c0_21, %c0_22] : memref<1x8x128xf32, #tpu.memory_space<vmem>>, vector<1x8x128xf32>
      tpu.vector_store %arg4[%c0_20, %c0_21, %c0_22], %37 {strides = array<i32>} : memref<1x8x128xf32, #tpu.memory_space<vmem>>, vector<1x8x128xf32>,
    } else {
    }
    return
  }
  func.func @transform_0(%arg0: i32, %arg1: i32) -> (i32, i32) {
    %c1_i32 = arith.constant 1 : i32
    %0 = arith.muli %arg0, %c1_i32 : i32
    %1 = arith.addi %0, %arg1 : i32
    %c0_i32 = arith.constant 0 : i32
    %2 = arith.minsi %1, %c0_i32 : i32
    %c0_i32_0 = arith.constant 0 : i32
    %c0_i32_1 = arith.constant 0 : i32
    return %2, %c0_i32_0 : i32, i32
  }
  func.func @transform_1(%arg0: i32, %arg1: i32) -> (i32, i32) {
    %c1_i32 = arith.constant 1 : i32
    %0 = arith.muli %arg0, %c1_i32 : i32
    %1 = arith.addi %0, %arg1 : i32
    %c0_i32 = arith.constant 0 : i32
    %2 = arith.minsi %1, %c0_i32 : i32
    %c0_i32_0 = arith.constant 0 : i32
    %c0_i32_1 = arith.constant 0 : i32
    return %2, %c0_i32_0 : i32, i32
  }
  func.func @transform_2(%arg0: i32, %arg1: i32) -> (i32, i32, i32) {
    %c0_i32 = arith.constant 0 : i32
    %c0_i32_0 = arith.constant 0 : i32
    %c0_i32_1 = arith.constant 0 : i32
    return %arg0, %c0_i32, %c0_i32_0 : i32, i32, i32
  }
}

</mosaic_0001>

<bundles_post_ra>
// kernel: tpu_custom_call.1
= control target key start
LH: loop header
LB: loop body
LE: loop exit
PB: predicated region body
PF: predicated region fallthrough
CT: control target
= control target key end

     0   :  { %7 = vsyncpa [#allocation4], 0  ;;  %s297_s0 = inlined_call_operand.hbm [shape: f32[16,128], index: 0, kind: input, shape index: {}]   ;;  %s298_s1 = inlined_call_operand.hbm [shape: f32[16,128], index: 1, kind: input, shape index: {}]   ;;  %s299_s2 = inlined_call_operand.hbm [shape: f32[1,8,128], index: 2, kind: output, shape index: {}]  }
   0x1   :  { %8 = vsyncpa [#allocation7], 0 }
   0x2   :  { %9 = vsyncpa [#allocation5], 0  ;;  %s241_s9 = smov [#allocation3]   ;;  %s169_s13 = scalar_lea.hbm %s297_s0, 256 }
   0x3   :  { %s21_s10 = sshll.u32 %s241_s9, 4  ;;  %p170_p0 = scmp.ne.s32.totalorder %s297_s0, %s169_s13  ;;  %s22_s10 = int_to_ptr.vmem [resolvable:$true] %s21_s10 }
   0x4   :  { %p173_p1 = scmp.lt.u32.totalorder %s169_s13, %s297_s0 }
   0x6   :  { %p175_p2 = pnand %p173_p1, %p170_p0 }
   0x8   :  { %178 = shalt.err (!%p175_p2)
}
   0x9   :  { %s179_s18 = scalar_lea.vmem %s22_s10, 256  ;;  %p184_p4 = scmp.lt.s32.totalorder %s22_s10, %s22_s10 }
   0xa   :  { %p180_p3 = scmp.ne.s32.totalorder %s22_s10, %s179_s18  ;;  %p185_p5 = scmp.lt.s32.totalorder %s179_s18, %s179_s18 }
   0xc   :  { %p186_p6 = por %p185_p5, %p184_p4 }
   0xe   :  { %p187_p7 = pnand %p186_p6, %p180_p3 }
  0x10   :  { %190 = shalt.err (!%p187_p7)
}
  0x11   :  { %s242_s19 = smov 128   ;;  %s243_s20 = smov 8  }
  0x12   :  { %27 = dma.hbm_to_vmem [thread:$0]  %s297_s0, 256, %s22_s10, [#allocation4], %s242_s19, %s242_s19, %s243_s20  }
  0x13   :  { %s244_s23 = smov [#allocation6]   ;;  %s191_s27 = scalar_lea.hbm %s298_s1, 256 }
  0x14   :  { %s39_s24 = sshll.u32 %s244_s23, 4  ;;  %p192_p8 = scmp.ne.s32.totalorder %s298_s1, %s191_s27  ;;  %s40_s24 = int_to_ptr.vmem [resolvable:$true] %s39_s24 }
  0x15   :  { %p195_p9 = scmp.lt.u32.totalorder %s191_s27, %s298_s1 }
  0x17   :  { %p197_p10 = pnand %p195_p9, %p192_p8 }
  0x19   :  { %200 = shalt.err (!%p197_p10)
}
  0x1a   :  { %s201_s4 = scalar_lea.vmem %s40_s24, 256  ;;  %p206_p12 = scmp.lt.s32.totalorder %s40_s24, %s40_s24 }
  0x1b   :  { %p202_p11 = scmp.ne.s32.totalorder %s40_s24, %s201_s4  ;;  %p207_p13 = scmp.lt.s32.totalorder %s201_s4, %s201_s4 }
  0x1d   :  { %p208_p0 = por %p207_p13, %p206_p12 }
  0x1f   :  { %p209_p1 = pnand %p208_p0, %p202_p11 }
  0x21   :  { %212 = shalt.err (!%p209_p1)
}
  0x22   :  { %45 = dma.hbm_to_vmem [thread:$0]  %s298_s1, 256, %s40_s24, [#allocation7], %s242_s19, %s242_s19, %s243_s20  }
  0x23   :  { %235 = dma.done.wait [#allocation4], 256  }
  0x24   :  { %236 = vsyncadd [#allocation4], 4294967040 }
  0x25   :  { %237 = dma.done.wait [#allocation7], 256  }
  0x26   :  { %238 = vsyncadd [#allocation7], 4294967040  ;;  %v65_v0 = vld [vmem:[#allocation3] sm:$0xff]  ;;  %v66_v1 = vld [vmem:[#allocation3 + $0x8] sm:$0xff]  ;;  %s245_s1 = smov [#allocation8]  }
  0x27   :  { %v67_v2 = vld [vmem:[#allocation6] sm:$0xff]  ;;  %v68_v3 = vld [vmem:[#allocation6 + $0x8] sm:$0xff]  ;;  %v87_v5 = vsub.f32 1.0, %v65_v0  ;;  %v88_v6 = vsub.f32 1.0, %v66_v1  ;;  %s138_s6 = sshll.u32 %s245_s1, 4  ;;  %s139_s6 = int_to_ptr.vmem [resolvable:$true] %s138_s6 }
  0x28   :  { %v69_v4 = vmul.f32 %v67_v2, %v65_v0  ;;  %v89_v7 = vsub.f32 1.0, %v67_v2  ;;  %v70_v8 = vmul.f32 %v68_v3, %v66_v1  ;;  %v90_v9 = vsub.f32 1.0, %v68_v3  ;;  %s213_s7 = scalar_lea.vmem %s139_s6, 128  ;;  %p218_p3 = scmp.lt.s32.totalorder %s139_s6, %s139_s6 }
  0x29   :  { %p214_p2 = scmp.ne.s32.totalorder %s139_s6, %s213_s7  ;;  %p219_p4 = scmp.lt.s32.totalorder %s213_s7, %s213_s7 }
  0x2a   :  { %v71_v10 = vadd.f32 1e-08, %v69_v4  ;;  %v91_v11 = vmul.f32 %v89_v7, %v87_v5  ;;  %v72_v12 = vadd.f32 1e-08, %v70_v8  ;;  %v92_v13 = vmul.f32 %v90_v9, %v88_v6 }
  0x2b   :  { %p220_p5 = por %p219_p4, %p218_p3 }
  0x2c   :  { %157 = vrsqrt.f32 %v71_v10  ;;  %v93_v14 = vadd.f32 1e-08, %v91_v11  ;;  %v94_v15 = vadd.f32 1e-08, %v92_v13  ;;  %vm75_vm0 = vcmp.eq.f32.partialorder %v71_v10, inf }
  0x2d   :  { %159 = vrsqrt.f32 %v72_v12  ;;  %vm82_vm1 = vcmp.eq.f32.partialorder %v72_v12, inf  ;;  %v78_v19 = vand.u32 2147483648, %v71_v10  ;;  %vm77_vm2 = vcmp.eq.f32.partialorder %v71_v10, 0.0  ;;  %p221_p6 = pnand %p220_p5, %p214_p2 }
  0x2e   :  { %161 = vrsqrt.f32 %v93_v14  ;;  %v85_v22 = vand.u32 2147483648, %v72_v12  ;;  %vm84_vm3 = vcmp.eq.f32.partialorder %v72_v12, 0.0  ;;  %vm97_vm4 = vcmp.eq.f32.partialorder %v93_v14, inf }
  0x2f   :  { %163 = vrsqrt.f32 %v94_v15  ;;  %v100_v25 = vand.u32 2147483648, %v93_v14  ;;  %vm99_vm5 = vcmp.eq.f32.partialorder %v93_v14, 0.0  ;;  %vm104_vm6 = vcmp.eq.f32.partialorder %v94_v15, inf }
  0x30   :  { %v107_v28 = vand.u32 2147483648, %v94_v15  ;;  %vm106_vm7 = vcmp.eq.f32.partialorder %v94_v15, 0.0 }
  0x36   :  { %v158_v16 = vpop.eup %157 }
  0x37   :  { %v160_v17 = vpop.eup %159  ;;  %v74_v18 = vmul.f32 %v158_v16, %v71_v10 }
  0x38   :  { %v81_v20 = vmul.f32 %v160_v17, %v72_v12  ;;  %v162_v23 = vpop.eup %161 }
  0x39   :  { %v76_v21 = vsel %vm75_vm0, %v71_v10, %v74_v18  ;;  %v164_v26 = vpop.eup %163  ;;  %v96_v27 = vmul.f32 %v162_v23, %v93_v14 }
  0x3a   :  { %v83_v24 = vsel %vm82_vm1, %v72_v12, %v81_v20  ;;  %v79_v29 = vsel %vm77_vm2, %v78_v19, %v76_v21  ;;  %v103_v30 = vmul.f32 %v164_v26, %v94_v15 }
  0x3b   :  { %v86_v31 = vsel %vm84_vm3, %v85_v22, %v83_v24  ;;  %v98_v32 = vsel %vm97_vm4, %v93_v14, %v96_v27 }
  0x3c   :  { %v101_v33 = vsel %vm99_vm5, %v100_v25, %v98_v32  ;;  %v105_v34 = vsel %vm104_vm6, %v94_v15, %v103_v30 }
  0x3d   :  { %v108_v35 = vsel %vm106_vm7, %v107_v28, %v105_v34  ;;  %v109_v36 = vadd.f32 %v101_v33, %v79_v29 }
  0x3e   :  { %v110_v37 = vadd.f32 %v108_v35, %v86_v31 }
  0x3f   :  { %v111_v38 = vsub.f32 1.0, %v109_v36 }
  0x40   :  { %v112_v39 = vsub.f32 1.0, %v110_v37 }
  0x41   :  { %v113_v40 = vmul.f32 -1.0, %v111_v38 }
  0x42   :  { %v114_v41 = vmul.f32 -1.0, %v112_v39 }
  0x43   :  { %v115_v42 = vmul.f32 1.442695, %v113_v40 }
  0x44   :  { %v117_v43 = vmul.f32 1.442695, %v114_v41 }
  0x45   :  { %165 = vpow2.f32 %v115_v42 }
  0x46   :  { %167 = vpow2.f32 %v117_v43 }
  0x4f   :  { %v166_v44 = vpop.eup %165 }
  0x50   :  { %v168_v45 = vpop.eup %167  ;;  %v119_v46 = vmul.f32 %v166_v44, %v109_v36 }
  0x51   :  { %v120_v47 = vmul.f32 %v168_v45, %v110_v37 }
  0x52   :  { %v121_v48 = vsub.f32 1.0, %v119_v46 }
  0x53   :  { %v122_v49 = vsub.f32 1.0, %v120_v47 }
  0x55   :  { %v124_v50 = vadd.f32 %v122_v49, %v121_v48 }
  0x57   :  { %131 = vst [vmem:[#allocation8] sm:$0xff] %v124_v50 }
  0x58   :  { %224 = shalt.err (!%p221_p6)
}
  0x59   :  { %s225_s10 = scalar_lea.hbm %s299_s2, 128 }
  0x5a   :  { %p226_p7 = scmp.ne.s32.totalorder %s299_s2, %s225_s10  ;;  %p229_p8 = scmp.lt.u32.totalorder %s225_s10, %s299_s2 }
  0x5c   :  { %p231_p9 = pnand %p229_p8, %p226_p7 }
  0x5e   :  { %234 = shalt.err (!%p231_p9)
}
  0x5f   :  { %141 = dma.vmem_to_hbm [thread:$0]  %s139_s6, 128, %s299_s2, [#allocation5]  }
  0x60   :  { %239 = dma.done.wait [#allocation5], 128  }
  0x61   :  { %240 = vsyncadd [#allocation5], 4294967168 }
  0x62   :  { %145 = vsyncpa [#allocation4], 1 }
  0x63   :  { %146 = vsyncpa [#allocation7], 1 }
  0x64   :  { %147 = vsyncpa [#allocation5], 1 }

</bundles_post_ra>
